<compile_context>
chip_gen: v6e
topology: v6e:2x2x1
jax: 0.10.0
libtpu: 0.0.40
codegen_flags: <defaults>
</compile_context>

<pallas_src>
from functools import partial

import jax
import jax.numpy as jnp
from jax.experimental import pallas as pl
from jax.experimental.pallas import tpu as pltpu

LANE = 128


# ---------------------------------------------------------------------------
# Fused Pallas kernel: conv(im2col matmul) + bias + ReLU + max-over-time + FC
# ---------------------------------------------------------------------------
def fused_cnn_kernel(*refs, num_convs, l_outs):
    # refs = [patches_0..n-1, conv_w_0..n-1, conv_b_0..n-1, fc_w, fc_b, out]
    patch_refs = refs[:num_convs]
    w_refs = refs[num_convs:2 * num_convs]
    b_refs = refs[2 * num_convs:3 * num_convs]
    fcw_ref = refs[3 * num_convs]
    fcb_ref = refs[3 * num_convs + 1]
    out_ref = refs[3 * num_convs + 2]

    pooled = []
    for i in range(num_convs):
        p = patch_refs[i][...]                              # (TB, l_pad, k*E) bf16
        tb, l_pad, ke = p.shape
        nf = w_refs[i].shape[-1]
        # One im2col matmul per conv width on the MXU (batch flattened into M).
        conv = jnp.dot(p.reshape(tb * l_pad, ke), w_refs[i][...],
                       preferred_element_type=jnp.float32)   # (TB*l_pad, F) f32
        conv = conv.reshape(tb, l_pad, nf) + b_refs[i][...]  # + bias (broadcast)
        conv = jnp.maximum(conv, 0.0)                        # ReLU
        if l_pad != l_outs[i]:
            # Padded time steps (zero patches) would evaluate to relu(bias); mask to 0.
            # Post-ReLU the true max is >= 0, so zeros can never win incorrectly.
            t_idx = jax.lax.broadcasted_iota(jnp.int32, (tb, l_pad, nf), 1)
            conv = jnp.where(t_idx < l_outs[i], conv, 0.0)
        pooled.append(jnp.max(conv, axis=1))                 # max over time -> (TB, F)

    feats = jnp.concatenate(pooled, axis=-1)                 # (TB, F_total) f32
    logits = jnp.dot(feats.astype(fcw_ref.dtype), fcw_ref[...],
                     preferred_element_type=jnp.float32)     # (TB, Dout_pad) f32
    out_ref[...] = logits + fcb_ref[...]                     # lane-dense store


# ---------------------------------------------------------------------------
# Wrappers (layout plumbing only: gather, im2col, padding)
# ---------------------------------------------------------------------------
def _im2col(emb, k, l_pad):
    """emb: (B, L, E) -> (B, l_pad, k*E); patch[b, t, j*E + e] = emb[b, t + j, e]."""
    _, L, _ = emb.shape
    l_out = L - k + 1
    p = jnp.concatenate([emb[:, j:j + l_out, :] for j in range(k)], axis=-1)
    if l_pad != l_out:
        p = jnp.pad(p, ((0, 0), (0, l_pad - l_out), (0, 0)))
    return p


def cnn_forward(ids, params, filter_sizes):
    """ids: (B, L) int32 -> logits (B, output_dim) f32."""
    num_convs = len(filter_sizes)
    B, L = ids.shape
    E = params["embedding"].shape[1]
    F = params["conv0_w"].shape[-1]
    f_total = num_convs * F
    output_dim = params["fc_w"].shape[-1]
    dout_pad = ((output_dim + LANE - 1) // LANE) * LANE

    # Embedding lookup (plain JAX gather); dropout == identity (eval mode).
    emb = jnp.take(params["embedding"], ids, axis=0)          # (B, L, E) bf16

    # Batch tiling: one grid step per TB rows.
    tb = B if B <= 128 else 128
    b_pad = ((B + tb - 1) // tb) * tb
    if b_pad != B:
        emb = jnp.pad(emb, ((0, b_pad - B), (0, 0), (0, 0)))

    l_outs = tuple(L - k + 1 for k in filter_sizes)
    l_pads = tuple(((lo + 7) // 8) * 8 for lo in l_outs)

    patches = [_im2col(emb, k, lp) for k, lp in zip(filter_sizes, l_pads)]
    conv_ws = [params[f"conv{i}_w"].reshape(k * E, F)          # (k*E, F) bf16
               for i, k in enumerate(filter_sizes)]
    conv_bs = [params[f"conv{i}_b"] for i in range(num_convs)]  # (1, F) f32

    fc_w = jnp.pad(params["fc_w"], ((0, 0), (0, dout_pad - output_dim)))
    fc_b = jnp.pad(params["fc_b"], ((0, 0), (0, dout_pad - output_dim)))

    in_specs = []
    for k, lp in zip(filter_sizes, l_pads):
        in_specs.append(pl.BlockSpec((tb, lp, k * E), lambda bi: (bi, 0, 0)))
    for k in filter_sizes:
        in_specs.append(pl.BlockSpec((k * E, F), lambda bi: (0, 0)))
    for _ in range(num_convs):
        in_specs.append(pl.BlockSpec((1, F), lambda bi: (0, 0)))
    in_specs.append(pl.BlockSpec((f_total, dout_pad), lambda bi: (0, 0)))
    in_specs.append(pl.BlockSpec((1, dout_pad), lambda bi: (0, 0)))

    out = pl.pallas_call(
        partial(fused_cnn_kernel, num_convs=num_convs, l_outs=l_outs),
        out_shape=jax.ShapeDtypeStruct((b_pad, dout_pad), jnp.float32),
        grid=(b_pad // tb,),
        in_specs=in_specs,
        out_specs=pl.BlockSpec((tb, dout_pad), lambda bi: (bi, 0)),
        compiler_params=pltpu.CompilerParams(dimension_semantics=("parallel",)),
    )(*patches, *conv_ws, *conv_bs, fc_w, fc_b)

    return out[:B, :output_dim]


def init_params(key, vocab_size, embedding_dim, n_filters, filter_sizes,
                output_dim, pad_index):
    keys = jax.random.split(key, 2 * len(filter_sizes) + 3)
    params = {}
    emb = 0.1 * jax.random.normal(keys[0], (vocab_size, embedding_dim), jnp.float32)
    emb = emb.at[pad_index].set(0.0)                          # padding_idx row is zero
    params["embedding"] = emb.astype(jnp.bfloat16)            # bf16 matmul operand
    for i, k in enumerate(filter_sizes):
        # Stored as (k, E, F): reshape -> (k*E, F) matches im2col col order j*E + e
        # (equivalent to PyTorch Conv1d weight [F, E, k] transposed to [k, E, F]).
        params[f"conv{i}_w"] = (0.1 * jax.random.normal(
            keys[1 + 2 * i], (k, embedding_dim, n_filters), jnp.float32)
        ).astype(jnp.bfloat16)
        params[f"conv{i}_b"] = 0.1 * jax.random.normal(
            keys[2 + 2 * i], (1, n_filters), jnp.float32)
    f_total = len(filter_sizes) * n_filters
    params["fc_w"] = (0.1 * jax.random.normal(
        keys[-2], (f_total, output_dim), jnp.float32)).astype(jnp.bfloat16)
    params["fc_b"] = 0.1 * jax.random.normal(keys[-1], (1, output_dim), jnp.float32)
    return params


if __name__ == "__main__":
    vocab_size = 50
    embedding_dim = 32
    n_filters = 8
    filter_sizes = (3, 4, 5)
    output_dim = 4
    dropout_rate = 0.5      # unused at inference
    pad_index = 0

    B, L = 2, 16

    key = jax.random.PRNGKey(0)
    pkey, ikey = jax.random.split(key)
    params = init_params(pkey, vocab_size, embedding_dim, n_filters,
                         filter_sizes, output_dim, pad_index)
    ids = jax.random.randint(ikey, (B, L), 0, vocab_size, dtype=jnp.int32)

    fwd = jax.jit(partial(cnn_forward, filter_sizes=filter_sizes))
    out = fwd(ids, params)
    out = jax.block_until_ready(out)
    assert out.shape == (B, output_dim), out.shape
    print("KERNEL_OK")
</pallas_src>

<mosaic_0001>
module attributes {stable_mosaic.version = 11 : i64} {
  func.func @fused_cnn_kernel(%arg0: i32, %arg1: memref<2x16x96xbf16, #tpu.memory_space<vmem>>, %arg2: memref<2x16x128xbf16, #tpu.memory_space<vmem>>, %arg3: memref<2x16x160xbf16, #tpu.memory_space<vmem>>, %arg4: memref<96x8xbf16, #tpu.memory_space<vmem>>, %arg5: memref<128x8xbf16, #tpu.memory_space<vmem>>, %arg6: memref<160x8xbf16, #tpu.memory_space<vmem>>, %arg7: memref<1x8xf32, #tpu.memory_space<vmem>>, %arg8: memref<1x8xf32, #tpu.memory_space<vmem>>, %arg9: memref<1x8xf32, #tpu.memory_space<vmem>>, %arg10: memref<24x128xbf16, #tpu.memory_space<vmem>>, %arg11: memref<1x128xf32, #tpu.memory_space<vmem>>, %arg12: memref<2x128xf32, #tpu.memory_space<vmem>>) attributes {dimension_semantics = [#tpu.dimension_semantics<parallel>], iteration_bounds = array<i64: 1>, scalar_prefetch = 0 : i64, scratch_operands = 0 : i64, tpu.core_type = #tpu.core_type<tc>, window_params = [{transform_indices = @transform_0, window_bounds = array<i64: 2, 16, 96>}, {transform_indices = @transform_1, window_bounds = array<i64: 2, 16, 128>}, {transform_indices = @transform_2, window_bounds = array<i64: 2, 16, 160>}, {pipeline_mode = #tpu.pipeline_mode<synchronous>, transform_indices = @transform_3, window_bounds = array<i64: 96, 8>}, {pipeline_mode = #tpu.pipeline_mode<synchronous>, transform_indices = @transform_4, window_bounds = array<i64: 128, 8>}, {pipeline_mode = #tpu.pipeline_mode<synchronous>, transform_indices = @transform_5, window_bounds = array<i64: 160, 8>}, {pipeline_mode = #tpu.pipeline_mode<synchronous>, transform_indices = @transform_6, window_bounds = array<i64: 1, 8>}, {pipeline_mode = #tpu.pipeline_mode<synchronous>, transform_indices = @transform_7, window_bounds = array<i64: 1, 8>}, {pipeline_mode = #tpu.pipeline_mode<synchronous>, transform_indices = @transform_8, window_bounds = array<i64: 1, 8>}, {pipeline_mode = #tpu.pipeline_mode<synchronous>, transform_indices = @transform_9, window_bounds = array<i64: 24, 128>}, {pipeline_mode = #tpu.pipeline_mode<synchronous>, transform_indices = @transform_10, window_bounds = array<i64: 1, 128>}, {transform_indices = @transform_11, window_bounds = array<i64: 2, 128>}]} {
    %c0 = arith.constant 0 : index
    %c0_0 = arith.constant 0 : index
    %c0_1 = arith.constant 0 : index
    %0 = vector.load %arg1[%c0, %c0_0, %c0_1] : memref<2x16x96xbf16, #tpu.memory_space<vmem>>, vector<2x16x96xbf16>
    %1 = vector.shape_cast %0 : vector<2x16x96xbf16> to vector<32x96xbf16>
    %c0_2 = arith.constant 0 : index
    %c0_3 = arith.constant 0 : index
    %2 = vector.load %arg4[%c0_2, %c0_3] : memref<96x8xbf16, #tpu.memory_space<vmem>>, vector<96x8xbf16>
    %cst = arith.constant dense<0.000000e+00> : vector<32x8xf32>
    %3 = tpu.matmul %1, %2, %cst {dimension_numbers = #tpu.dot_dimension_numbers<[1], [0], [0], [1], [0, 0, 1, 1], [], []>} : vector<32x96xbf16>, vector<96x8xbf16>, vector<32x8xf32> -> vector<32x8xf32>
    %4 = vector.shape_cast %3 : vector<32x8xf32> to vector<2x16x8xf32>
    %c0_4 = arith.constant 0 : index
    %c0_5 = arith.constant 0 : index
    %5 = vector.load %arg7[%c0_4, %c0_5] : memref<1x8xf32, #tpu.memory_space<vmem>>, vector<1x8xf32>
    %6 = vector.shape_cast %5 : vector<1x8xf32> to vector<1x1x8xf32>
    %7 = vector.broadcast %6 : vector<1x1x8xf32> to vector<2x16x8xf32>
    %8 = arith.addf %4, %7 : vector<2x16x8xf32>
    %cst_6 = arith.constant 0.000000e+00 : f32
    %9 = vector.broadcast %cst_6 : f32 to vector<2x16x8xf32>
    %10 = arith.maximumf %8, %9 : vector<2x16x8xf32>
    %11 = tpu.iota {dimensions = array<i32: 1>} : vector<2x16x8xi32>
    %c14_i32 = arith.constant 14 : i32
    %12 = vector.broadcast %c14_i32 : i32 to vector<2x16x8xi32>
    %13 = arith.cmpi slt, %11, %12 : vector<2x16x8xi32>
    %cst_7 = arith.constant 0.000000e+00 : f32
    %14 = vector.broadcast %cst_7 : f32 to vector<2x16x8xf32>
    %15 = arith.select %13, %10, %14 : vector<2x16x8xi1>, vector<2x16x8xf32>
    %cst_8 = arith.constant dense<0xFF800000> : vector<2x8xf32>
    %16 = vector.multi_reduction <maximumf>, %15, %cst_8 [1] : vector<2x16x8xf32> to vector<2x8xf32>
    %c0_9 = arith.constant 0 : index
    %c0_10 = arith.constant 0 : index
    %c0_11 = arith.constant 0 : index
    %17 = vector.load %arg2[%c0_9, %c0_10, %c0_11] : memref<2x16x128xbf16, #tpu.memory_space<vmem>>, vector<2x16x128xbf16>
    %18 = vector.shape_cast %17 : vector<2x16x128xbf16> to vector<32x128xbf16>
    %c0_12 = arith.constant 0 : index
    %c0_13 = arith.constant 0 : index
    %19 = vector.load %arg5[%c0_12, %c0_13] : memref<128x8xbf16, #tpu.memory_space<vmem>>, vector<128x8xbf16>
    %cst_14 = arith.constant dense<0.000000e+00> : vector<32x8xf32>
    %20 = tpu.matmul %18, %19, %cst_14 {dimension_numbers = #tpu.dot_dimension_numbers<[1], [0], [0], [1], [0, 0, 1, 1], [], []>} : vector<32x128xbf16>, vector<128x8xbf16>, vector<32x8xf32> -> vector<32x8xf32>
    %21 = vector.shape_cast %20 : vector<32x8xf32> to vector<2x16x8xf32>
    %c0_15 = arith.constant 0 : index
    %c0_16 = arith.constant 0 : index
    %22 = vector.load %arg8[%c0_15, %c0_16] : memref<1x8xf32, #tpu.memory_space<vmem>>, vector<1x8xf32>
    %23 = vector.shape_cast %22 : vector<1x8xf32> to vector<1x1x8xf32>
    %24 = vector.broadcast %23 : vector<1x1x8xf32> to vector<2x16x8xf32>
    %25 = arith.addf %21, %24 : vector<2x16x8xf32>
    %cst_17 = arith.constant 0.000000e+00 : f32
    %26 = vector.broadcast %cst_17 : f32 to vector<2x16x8xf32>
    %27 = arith.maximumf %25, %26 : vector<2x16x8xf32>
    %28 = tpu.iota {dimensions = array<i32: 1>} : vector<2x16x8xi32>
    %c13_i32 = arith.constant 13 : i32
    %29 = vector.broadcast %c13_i32 : i32 to vector<2x16x8xi32>
    %30 = arith.cmpi slt, %28, %29 : vector<2x16x8xi32>
    %cst_18 = arith.constant 0.000000e+00 : f32
    %31 = vector.broadcast %cst_18 : f32 to vector<2x16x8xf32>
    %32 = arith.select %30, %27, %31 : vector<2x16x8xi1>, vector<2x16x8xf32>
    %cst_19 = arith.constant dense<0xFF800000> : vector<2x8xf32>
    %33 = vector.multi_reduction <maximumf>, %32, %cst_19 [1] : vector<2x16x8xf32> to vector<2x8xf32>
    %c0_20 = arith.constant 0 : index
    %c0_21 = arith.constant 0 : index
    %c0_22 = arith.constant 0 : index
    %34 = vector.load %arg3[%c0_20, %c0_21, %c0_22] : memref<2x16x160xbf16, #tpu.memory_space<vmem>>, vector<2x16x160xbf16>
    %35 = vector.shape_cast %34 : vector<2x16x160xbf16> to vector<32x160xbf16>
    %c0_23 = arith.constant 0 : index
    %c0_24 = arith.constant 0 : index
    %36 = vector.load %arg6[%c0_23, %c0_24] : memref<160x8xbf16, #tpu.memory_space<vmem>>, vector<160x8xbf16>
    %cst_25 = arith.constant dense<0.000000e+00> : vector<32x8xf32>
    %37 = tpu.matmul %35, %36, %cst_25 {dimension_numbers = #tpu.dot_dimension_numbers<[1], [0], [0], [1], [0, 0, 1, 1], [], []>} : vector<32x160xbf16>, vector<160x8xbf16>, vector<32x8xf32> -> vector<32x8xf32>
    %38 = vector.shape_cast %37 : vector<32x8xf32> to vector<2x16x8xf32>
    %c0_26 = arith.constant 0 : index
    %c0_27 = arith.constant 0 : index
    %39 = vector.load %arg9[%c0_26, %c0_27] : memref<1x8xf32, #tpu.memory_space<vmem>>, vector<1x8xf32>
    %40 = vector.shape_cast %39 : vector<1x8xf32> to vector<1x1x8xf32>
    %41 = vector.broadcast %40 : vector<1x1x8xf32> to vector<2x16x8xf32>
    %42 = arith.addf %38, %41 : vector<2x16x8xf32>
    %cst_28 = arith.constant 0.000000e+00 : f32
    %43 = vector.broadcast %cst_28 : f32 to vector<2x16x8xf32>
    %44 = arith.maximumf %42, %43 : vector<2x16x8xf32>
    %45 = tpu.iota {dimensions = array<i32: 1>} : vector<2x16x8xi32>
    %c12_i32 = arith.constant 12 : i32
    %46 = vector.broadcast %c12_i32 : i32 to vector<2x16x8xi32>
    %47 = arith.cmpi slt, %45, %46 : vector<2x16x8xi32>
    %cst_29 = arith.constant 0.000000e+00 : f32
    %48 = vector.broadcast %cst_29 : f32 to vector<2x16x8xf32>
    %49 = arith.select %47, %44, %48 : vector<2x16x8xi1>, vector<2x16x8xf32>
    %cst_30 = arith.constant dense<0xFF800000> : vector<2x8xf32>
    %50 = vector.multi_reduction <maximumf>, %49, %cst_30 [1] : vector<2x16x8xf32> to vector<2x8xf32>
    %51 = tpu.concatenate %16, %33, %50 in 1 : vector<2x8xf32>, vector<2x8xf32>, vector<2x8xf32> -> vector<2x24xf32>
    %52 = arith.truncf %51 : vector<2x24xf32> to vector<2x24xbf16>
    %c0_31 = arith.constant 0 : index
    %c0_32 = arith.constant 0 : index
    %53 = vector.load %arg10[%c0_31, %c0_32] : memref<24x128xbf16, #tpu.memory_space<vmem>>, vector<24x128xbf16>
    %cst_33 = arith.constant dense<0.000000e+00> : vector<2x128xf32>
    %54 = tpu.matmul %52, %53, %cst_33 {dimension_numbers = #tpu.dot_dimension_numbers<[1], [0], [0], [1], [0, 0, 1, 1], [], []>} : vector<2x24xbf16>, vector<24x128xbf16>, vector<2x128xf32> -> vector<2x128xf32>
    %c0_34 = arith.constant 0 : index
    %c0_35 = arith.constant 0 : index
    %55 = vector.load %arg11[%c0_34, %c0_35] : memref<1x128xf32, #tpu.memory_space<vmem>>, vector<1x128xf32>
    %56 = vector.broadcast %55 : vector<1x128xf32> to vector<2x128xf32>
    %57 = arith.addf %54, %56 : vector<2x128xf32>
    %c0_36 = arith.constant 0 : index
    %c0_37 = arith.constant 0 : index
    %58 = vector.load %arg12[%c0_36, %c0_37] : memref<2x128xf32, #tpu.memory_space<vmem>>, vector<2x128xf32>
    tpu.vector_store %arg12[%c0_36, %c0_37], %57 {strides = array<i32>} : memref<2x128xf32, #tpu.memory_space<vmem>>, vector<2x128xf32>,
    return
  }
  func.func @transform_0(%arg0: i32) -> (i32, i32, i32) {
    %c0_i32 = arith.constant 0 : i32
    %c0_i32_0 = arith.constant 0 : i32
    %c0_i32_1 = arith.constant 0 : i32
    return %arg0, %c0_i32, %c0_i32_0 : i32, i32, i32
  }
  func.func @transform_1(%arg0: i32) -> (i32, i32, i32) {
    %c0_i32 = arith.constant 0 : i32
    %c0_i32_0 = arith.constant 0 : i32
    %c0_i32_1 = arith.constant 0 : i32
    return %arg0, %c0_i32, %c0_i32_0 : i32, i32, i32
  }
  func.func @transform_2(%arg0: i32) -> (i32, i32, i32) {
    %c0_i32 = arith.constant 0 : i32
    %c0_i32_0 = arith.constant 0 : i32
    %c0_i32_1 = arith.constant 0 : i32
    return %arg0, %c0_i32, %c0_i32_0 : i32, i32, i32
  }
  func.func @transform_3(%arg0: i32) -> (i32, i32) {
    %c0_i32 = arith.constant 0 : i32
    %c0_i32_0 = arith.constant 0 : i32
    %c0_i32_1 = arith.constant 0 : i32
    return %c0_i32, %c0_i32_0 : i32, i32
  }
  func.func @transform_4(%arg0: i32) -> (i32, i32) {
    %c0_i32 = arith.constant 0 : i32
    %c0_i32_0 = arith.constant 0 : i32
    %c0_i32_1 = arith.constant 0 : i32
    return %c0_i32, %c0_i32_0 : i32, i32
  }
  func.func @transform_5(%arg0: i32) -> (i32, i32) {
    %c0_i32 = arith.constant 0 : i32
    %c0_i32_0 = arith.constant 0 : i32
    %c0_i32_1 = arith.constant 0 : i32
    return %c0_i32, %c0_i32_0 : i32, i32
  }
  func.func @transform_6(%arg0: i32) -> (i32, i32) {
    %c0_i32 = arith.constant 0 : i32
    %c0_i32_0 = arith.constant 0 : i32
    %c0_i32_1 = arith.constant 0 : i32
    return %c0_i32, %c0_i32_0 : i32, i32
  }
  func.func @transform_7(%arg0: i32) -> (i32, i32) {
    %c0_i32 = arith.constant 0 : i32
    %c0_i32_0 = arith.constant 0 : i32
    %c0_i32_1 = arith.constant 0 : i32
    return %c0_i32, %c0_i32_0 : i32, i32
  }
  func.func @transform_8(%arg0: i32) -> (i32, i32) {
    %c0_i32 = arith.constant 0 : i32
    %c0_i32_0 = arith.constant 0 : i32
    %c0_i32_1 = arith.constant 0 : i32
    return %c0_i32, %c0_i32_0 : i32, i32
  }
  func.func @transform_9(%arg0: i32) -> (i32, i32) {
    %c0_i32 = arith.constant 0 : i32
    %c0_i32_0 = arith.constant 0 : i32
    %c0_i32_1 = arith.constant 0 : i32
    return %c0_i32, %c0_i32_0 : i32, i32
  }
  func.func @transform_10(%arg0: i32) -> (i32, i32) {
    %c0_i32 = arith.constant 0 : i32
    %c0_i32_0 = arith.constant 0 : i32
    %c0_i32_1 = arith.constant 0 : i32
    return %c0_i32, %c0_i32_0 : i32, i32
  }
  func.func @transform_11(%arg0: i32) -> (i32, i32) {
    %c0_i32 = arith.constant 0 : i32
    %c0_i32_0 = arith.constant 0 : i32
    return %arg0, %c0_i32 : i32, i32
  }
}

</mosaic_0001>

<bundles_post_ra>
// kernel: cnn_forward.1
= control target key start
LH: loop header
LB: loop body
LE: loop exit
PB: predicated region body
PF: predicated region fallthrough
CT: control target
= control target key end

     0   :  { %v841_v1 = vmov 0   ;;  %vm102_vm0 = vcmask 785408   ;;  %vm471_vm1 = vcmask 261120   ;;  %s1065_s0 = inlined_call_operand.vmem [shape: bf16[2,16,96], index: 0, kind: input, shape index: {}]   ;;  %s1066_s1 = inlined_call_operand.vmem [shape: bf16[2,16,128], index: 1, kind: input, shape index: {}]   ;;  %s1067_s2 = inlined_call_operand.vmem [shape: bf16[2,16,160], index: 2, kind: input, shape index: {}]   ;;  %s1068_s3 = inlined_call_operand.vmem [shape: bf16[96,8], index: 3, kind: input, shape index: {}]   ;;  %s1069_s4 = inlined_call_operand.vmem [shape: bf16[128,8], index: 4, kind: input, shape index: {}]   ;;  %s1070_s5 = inlined_call_operand.vmem [shape: bf16[160,8], index: 5, kind: input, shape index: {}]   ;;  %s1071_s6 = inlined_call_operand.vmem [shape: f32[1,8], index: 6, kind: input, shape index: {}]   ;;  %s1072_s7 = inlined_call_operand.vmem [shape: f32[1,8], index: 7, kind: input, shape index: {}]   ;;  %s1073_s8 = inlined_call_operand.vmem [shape: f32[1,8], index: 8, kind: input, shape index: {}]   ;;  %s1074_s9 = inlined_call_operand.vmem [shape: bf16[24,128], index: 9, kind: input, shape index: {}]   ;;  %s1075_s10 = inlined_call_operand.vmem [shape: f32[1,128], index: 10, kind: input, shape index: {}]   ;;  %s1076_s11 = inlined_call_operand.hbm [shape: f32[2,128], index: 11, kind: output, shape index: {}]  }
   0x1   :  { %v783_v0 = vld [vmem:[%s1068_s3 + $0x28] sm:$0xff]   ;;  %478 = vmatprep.subr.bf16.mxu0 %v841_v1  ;;  %v784_v2 = vld [vmem:[%s1070_s5 + $0x38] sm:$0xff]   ;;  %v785_v3 = vld [vmem:[%s1068_s3 + $0x20] sm:$0xff]  }
   0x2   :  { %733 = vmatprep.subr.bf16.mxu1 %v783_v0  ;;  %479 = vmatpush1.bf16.msra.mxu0 %v784_v2  ;;  %v786_v4 = vld [vmem:[%s1070_s5 + $0x30] sm:$0xff]   ;;  %v787_v5 = vld [vmem:[%s1068_s3 + $0x18] sm:$0xff]   ;;  %v788_v6 = vld [vmem:[%s1070_s5 + $0x28] sm:$0xff]  }
   0x3   :  { %734 = vmatpush3.bf16.msra.mxu1 %v783_v0  ;;  %480 = vmatprep.subr.bf16.mxu0 %v841_v1  ;;  %v789_v7 = vld [vmem:[%s1068_s3 + $0x10] sm:$0xff]   ;;  %v790_v8 = vld [vmem:[%s1070_s5 + $0x20] sm:$0xff]   ;;  %v791_v9 = vld [vmem:[%s1068_s3 + $0x8] sm:$0xff]  }
   0x4   :  { %735 = vmatprep.subr.bf16.mxu1 %v785_v3  ;;  %v795_v10 = vld [vmem:[%s1065_s0] sm:$0xff]   ;;  %v792_v11 = vld [vmem:[%s1070_s5 + $0x18] sm:$0xff]   ;;  %v794_v13 = vld [vmem:[%s1070_s5 + $0x10] sm:$0xff]  }
   0x5   :  { %745 = vmatprep.mubr.msk.bf16.mxu1 %vm102_vm0, %v795_v10  ;;  %v793_v12 = vld [vmem:[%s1068_s3] sm:$0xff]   ;;  %v797_v14 = vld [vmem:[%s1069_s4 + $0x38] sm:$0xff]   ;;  %v796_v15 = vld [vmem:[%s1065_s0 + $0x8] sm:$0xff]  }
   0x6   :  { %481 = vmatpush1.bf16.msra.mxu0 %v786_v4  ;;  %v798_v16 = vld [vmem:[%s1070_s5 + $0x8] sm:$0xff]   ;;  %v799_v18 = vld [vmem:[%s1069_s4 + $0x30] sm:$0xff]   ;;  %v800_v19 = vld [vmem:[%s1070_s5] sm:$0xff]  }
   0x7   :  { %736 = vmatpush3.bf16.msra.mxu1 %v785_v3  ;;  %482 = vmatprep.subr.bf16.mxu0 %v841_v1  ;;  %v807_v17 = vld [vmem:[%s1067_s2 + $0x4] ss:$8 sps:$4 sm:$0xff]  }
   0x8   :  { %737 = vmatprep.subr.bf16.mxu1 %v787_v5  ;;  %705 = vmatprep.mubr.msk.bf16.mxu0 %vm471_vm1, %v807_v17  ;;  %v801_v20 = vld [vmem:[%s1069_s4 + $0x28] sm:$0xff]   ;;  %v815_v21 = vld [vmem:[%s1066_s1] sm:$0xff]  }
   0x9   :  { %v802_v22 = vld [vmem:[%s1070_s5 + $0x48] sm:$0xff]  }
   0xa   :  { %483 = vmatpush1.bf16.msra.mxu0 %v788_v6 }
   0xb   :  { %738 = vmatpush3.bf16.msra.mxu1 %v787_v5  ;;  %484 = vmatprep.subr.bf16.mxu0 %v841_v1 }
   0xc   :  { %739 = vmatprep.subr.bf16.mxu1 %v789_v7 }
   0xe   :  { %485 = vmatpush1.bf16.msra.mxu0 %v790_v8 }
   0xf   :  { %740 = vmatpush3.bf16.msra.mxu1 %v789_v7  ;;  %486 = vmatprep.subr.bf16.mxu0 %v841_v1 }
  0x10   :  { %741 = vmatprep.subr.bf16.mxu1 %v791_v9 }
  0x12   :  { %487 = vmatpush1.bf16.msra.mxu0 %v792_v11 }
  0x13   :  { %742 = vmatpush3.bf16.msra.mxu1 %v791_v9  ;;  %488 = vmatprep.subr.bf16.mxu0 %v841_v1 }
  0x14   :  { %743 = vmatprep.subr.bf16.mxu1 %v793_v12 }
  0x16   :  { %489 = vmatpush1.bf16.msra.mxu0 %v794_v13 }
  0x17   :  { %744 = vmatpush3.bf16.msra.mxu1 %v793_v12  ;;  %490 = vmatprep.subr.bf16.mxu0 %v841_v1 }
  0x18   :  { %749 = vmatprep.subr.bf16.mxu1 %v797_v14 }
  0x1a   :  { %746 = vmatmul.mubr.msk.bf16.vlgmr.msra.gmra.mxu1 %vm102_vm0, %v796_v15  ;;  %491 = vmatpush1.bf16.msra.mxu0 %v798_v16 }
  0x1b   :  { %750 = vmatpush3.bf16.msra.mxu1 %v797_v14  ;;  %492 = vmatprep.subr.bf16.mxu0 %v841_v1 }
  0x1c   :  { %751 = vmatprep.subr.bf16.mxu1 %v799_v18 }
  0x1e   :  { %493 = vmatpush1.bf16.msra.mxu0 %v800_v19 }
  0x1f   :  { %752 = vmatpush3.bf16.msra.mxu1 %v799_v18 }
  0x20   :  { %16 = vsyncpa [#allocation3], 0  ;;  %506 = vmatprep.subr.bf16.mxu0 %v841_v1  ;;  %753 = vmatprep.subr.bf16.mxu1 %v801_v20  ;;  %v803_v23 = vld [vmem:[%s1069_s4 + $0x20] sm:$0xff]   ;;  %v808_v25 = vld [vmem:[%s1069_s4 + $0x18] sm:$0xff]   ;;  %vm610_vm2 = vcmask 1043456   ;;  %v842_v34 = vmov 0.0   ;;  %v173_v37 = vlaneseq }
  0x21   :  { %765 = vmatprep.mubr.bf16.mxu1 %v815_v21  ;;  %v804_v24 = vld [vmem:[%s1070_s5 + $0x40] sm:$0xff]   ;;  %v810_v27 = vld [vmem:[%s1067_s2 + $0x14] ss:$8 sps:$4 sm:$0xff]   ;;  %v813_v29 = vld [vmem:[%s1069_s4 + $0x8] sm:$0xff]   ;;  %vm182_vm4 = vcmask 64512   ;;  %vm568_vm5 = vcmask 1041409  }
  0x22   :  { %507 = vmatpush2.bf16.msra.mxu0 %v802_v22  ;;  %v805_v26 = vld [vmem:[%s1067_s2] ss:$8 sps:$4 sm:$0xff]   ;;  %v809_v28 = vld [vmem:[%s1069_s4 + $0x10] sm:$0xff]   ;;  %v174_v38 = vshrl.u32 %v173_v37, 7  ;;  %vm843_vm8 = vmmov 0   ;;  %s845_s23 = smov 16  }
  0x23   :  { %754 = vmatpush3.bf16.msra.mxu1 %v801_v20  ;;  %508 = vmatprep.subr.bf16.mxu0 %v841_v1  ;;  %v812_v30 = vld [vmem:[%s1067_s2 + $0x10] ss:$8 sps:$4 sm:$0xff]   ;;  %v814_v31 = vld [vmem:[%s1069_s4] sm:$0xff]   ;;  %v816_v32 = vld [vmem:[%s1066_s1 + $0x8] sm:$0xff]   ;;  %vm584_vm9 = vcmask 130048   ;;  %vm606_vm10 = vcmask 195584  }
  0x24   :  { %755 = vmatprep.subr.bf16.mxu1 %v803_v23  ;;  %v817_v33 = vld [vmem:[%s1074_s9 + $0x8] ss:$0 sps:$4 sm:$0xff]   ;;  %v818_v36 = vld [vmem:[%s1074_s9] sm:$0xff]   ;;  %v1028_v43 = vadd.s32 8, %v174_v38  ;;  %s846_s26 = smov [#allocation2]  }
  0x25   :  { %v612_v35 = vsel %vm610_vm2, %v817_v33, 0  ;;  %v679_v39 = vld [vmem:[%s1071_s6] ss:$0 sm:$0xff]  ;;  %s661_s27 = sshll.u32 %s846_s26, 4  ;;  %s662_s27 = int_to_ptr.vmem [resolvable:$true] %s661_s27 }
  0x26   :  { %509 = vmatpush2.bf16.msra.mxu0 %v804_v24  ;;  %vm177_vm3 = vcmp.lt.s32.totalorder %v1028_v43, 14  ;;  %v707_v6 = vld [vmem:[%s1073_s8] ss:$0 sm:$0xff]  ;;  %vm543_vm6 = vcmp.lt.s32.totalorder %v1028_v43, 12  ;;  %vm346_vm7 = vcmp.lt.s32.totalorder %v1028_v43, 13  ;;  %s819_s28 = scalar_lea.vmem %s662_s27, 32  ;;  %p824_p1 = scmp.lt.s32.totalorder %s662_s27, %s662_s27 }
  0x27   :  { %756 = vmatpush3.bf16.msra.mxu1 %v803_v23  ;;  %769 = vmatprep.subr.bf16.mxu0 %v842_v34  ;;  %p820_p0 = scmp.ne.s32.totalorder %s662_s27, %s819_s28  ;;  %p825_p2 = scmp.lt.s32.totalorder %s819_s28, %s819_s28 }
  0x28   :  { %757 = vmatprep.subr.bf16.mxu1 %v808_v25 }
  0x29   :  { %511 = vmatmul.mubr.bf16.vlgmr.msra.gmra.mxu0 %v805_v26  ;;  %p826_p3 = por %p825_p2, %p824_p1 }
  0x2a   :  { %706 = vmatprep.mubr.msk.bf16.mxu0 %vm471_vm1, %v810_v27  ;;  %770 = vmatpush3.bf16.msra.mxu0 %v612_v35 }
  0x2b   :  { %758 = vmatpush3.bf16.msra.mxu1 %v808_v25  ;;  %771 = vmatprep.subr.bf16.mxu0 %v842_v34  ;;  %p827_p4 = pnand %p826_p3, %p820_p0 }
  0x2c   :  { %759 = vmatprep.subr.bf16.mxu1 %v809_v28 }
  0x2e   :  { %772 = vmatpush3.bf16.msra.mxu0 %v818_v36 }
  0x2f   :  { %760 = vmatpush3.bf16.msra.mxu1 %v809_v28  ;;  %v690_v28 = vld [vmem:[%s1072_s7] ss:$0 sm:$0xff]  ;;  %s844_s7 = smov 8  }
  0x30   :  { %761 = vmatprep.subr.bf16.mxu1 %v813_v29 }
  0x31   :  { %519 = vmatmul.mubr.bf16.gmra.mxu0 %v812_v30 }
  0x32   :  { %773 = vmatprep.mubr.msk.bf16.mxu0 %vm843_vm8, %v842_v34 }
  0x33   :  { %762 = vmatpush3.bf16.msra.mxu1 %v813_v29 }
  0x34   :  { %763 = vmatprep.subr.bf16.mxu1 %v814_v31 }
  0x37   :  { %764 = vmatpush3.bf16.msra.mxu1 %v814_v31 }
  0x3a   :  { %766 = vmatmul.mubr.bf16.vlgmr.msra.gmra.mxu1 %v816_v32 }
  0xda   :  { %v747_v40 = vpop.f32.mrf.mxu1 }
  0xdb   :  { %v167_v41 = vadd.f32 %v747_v40, %v679_v39 }
  0xdc   :  { %v143_v42 = vpop.f32.mrf.mxu1 }
  0xdd   :  { %v165_v44 = vadd.f32 %v679_v39, %v143_v42  ;;  %v171_v47 = vmax.f32 %v167_v41, 0.0 }
  0xde   :  { %v748_v45 = vpop.f32.mrf.mxu1 }
  0xdf   :  { %v168_v46 = vadd.f32 %v748_v45, %v679_v39  ;;  %v169_v51 = vmax.f32 %v165_v44, 0.0  ;;  %v192_v54 = vsel %vm182_vm4, %v171_v47, -inf }
  0xe0   :  { %v146_v48 = vpop.f32.mrf.mxu1 }
  0xe1   :  { %v172_v49 = vmax.f32 %v168_v46, 0.0  ;;  %v166_v50 = vadd.f32 %v679_v39, %v146_v48  ;;  %v183_v58 = vsel %vm182_vm4, %v169_v51, -inf }
  0xe3   :  { %v181_v52 = vsel %vm177_vm3, %v172_v49, 0.0  ;;  %v170_v53 = vmax.f32 %v166_v50, 0.0 }
  0xe4   :  { %v193_v55 = vsel %vm182_vm4, %v181_v52, -inf }
  0xe5   :  { %v194_v56 = vmax.f32 %v192_v54, %v193_v55  ;;  %v179_v57 = vsel %vm177_vm3, %v170_v53, 0.0 }
  0xe6   :  { %v184_v59 = vsel %vm182_vm4, %v179_v57, -inf }
  0xe7   :  { %v195_v60 = vrot.slane %v194_v56, 4  ;;  %v185_v61 = vmax.f32 %v183_v58, %v184_v59 }
  0xe9   :  { %v196_v62 = vmax.f32 %v194_v56, %v195_v60  ;;  %v186_v63 = vrot.slane %v185_v61, 4  ;;  %v512_v0 = vpop.f32.mrf.mxu0 }
  0xea   :  { %v534_v17 = vadd.f32 %v707_v6, %v512_v0 }
  0xeb   :  { %v197_v1 = vrot.slane %v196_v62, 2  ;;  %v187_v2 = vmax.f32 %v185_v61, %v186_v63  ;;  %v514_v3 = vpop.f32.mrf.mxu0 }
  0xec   :  { %v538_v24 = vmax.f32 %v534_v17, 0.0 }
  0xed   :  { %v198_v4 = vmax.f32 %v196_v62, %v197_v1  ;;  %v188_v5 = vrot.slane %v187_v2, 2  ;;  %v515_v7 = vpop.f32.mrf.mxu0 }
  0xee   :  { %v535_v11 = vadd.f32 %v707_v6, %v515_v7  ;;  %v548_v32 = vsel %vm182_vm4, %v538_v24, -inf  ;;  %v708_v24 = vld [vmem:[%s1075_s10] ss:$0 sm:$0xff] }
  0xef   :  { %v189_v8 = vmax.f32 %v187_v2, %v188_v5  ;;  %v199_v9 = vrot.slane %v198_v4, 1  ;;  %v517_v10 = vpop.f32.mrf.mxu0 }
  0xf0   :  { %v539_v19 = vmax.f32 %v535_v11, 0.0 }
  0xf1   :  { %v190_v12 = vrot.slane %v189_v8, 1  ;;  %v520_v13 = vpop.f32.mrf.mxu0  ;;  %v200_v15 = vmax.f32 %v198_v4, %v199_v9 }
  0xf2   :  { %v536_v14 = vadd.f32 %v707_v6, %v520_v13  ;;  %v545_v26 = vsel %vm543_vm6, %v539_v19, 0.0 }
  0xf3   :  { %v191_v16 = vmax.f32 %v189_v8, %v190_v12  ;;  %v522_v18 = vpop.f32.mrf.mxu0  ;;  %v549_v33 = vsel %vm182_vm4, %v545_v26, -inf }
  0xf4   :  { %v540_v21 = vmax.f32 %v536_v14, 0.0  ;;  %v550_v41 = vmax.f32 %v548_v32, %v549_v33 }
  0xf5   :  { %v1039_v20 = vsel %vm568_vm5, %v200_v15, %v191_v16  ;;  %v523_v22 = vpop.f32.mrf.mxu0 }
  0xf6   :  { %v537_v23 = vadd.f32 %v707_v6, %v523_v22  ;;  %v557_v29 = vsel %vm182_vm4, %v540_v21, -inf  ;;  %v551_v50 = vrot.slane %v550_v41, 4 }
  0xf7   :  { %v525_v25 = vpop.f32.mrf.mxu0 }
  0xf8   :  { %v541_v27 = vmax.f32 %v537_v23, 0.0  ;;  %v552_v43 = vmax.f32 %v550_v41, %v551_v50 }
  0xfa   :  { %v767_v30 = vpop.f32.mrf.mxu1  ;;  %v547_v31 = vsel %vm543_vm6, %v541_v27, 0.0  ;;  %v553_v1 = vrot.slane %v552_v43, 2 }
  0xfb   :  { %v558_v35 = vsel %vm182_vm4, %v547_v31, -inf  ;;  %v339_v36 = vadd.f32 %v767_v30, %v690_v28 }
  0xfc   :  { %v315_v37 = vpop.f32.mrf.mxu1  ;;  %v559_v38 = vmax.f32 %v557_v29, %v558_v35  ;;  %v554_v9 = vmax.f32 %v552_v43, %v553_v1 }
  0xfd   :  { %v337_v39 = vadd.f32 %v690_v28, %v315_v37  ;;  %v343_v44 = vmax.f32 %v339_v36, 0.0 }
  0xfe   :  { %v768_v40 = vpop.f32.mrf.mxu1  ;;  %v560_v46 = vrot.slane %v559_v38, 4  ;;  %v555_v14 = vrot.slane %v554_v9, 1 }
  0xff   :  { %v340_v42 = vadd.f32 %v768_v40, %v690_v28  ;;  %v341_v49 = vmax.f32 %v337_v39, 0.0  ;;  %v360_v53 = vsel %vm182_vm4, %v343_v44, -inf }
 0x100   :  { %v318_v45 = vpop.f32.mrf.mxu1  ;;  %v561_v55 = vmax.f32 %v559_v38, %v560_v46  ;;  %v556_v17 = vmax.f32 %v554_v9, %v555_v14 }
 0x101   :  { %v344_v47 = vmax.f32 %v340_v42, 0.0  ;;  %v338_v48 = vadd.f32 %v690_v28, %v318_v45  ;;  %v351_v58 = vsel %vm182_vm4, %v341_v49, -inf }
 0x102   :  { %v562_v62 = vrot.slane %v561_v55, 2 }
 0x103   :  { %v350_v51 = vsel %vm346_vm7, %v344_v47, 0.0  ;;  %v342_v52 = vmax.f32 %v338_v48, 0.0 }
 0x104   :  { %v361_v54 = vsel %vm182_vm4, %v350_v51, -inf  ;;  %v563_v6 = vmax.f32 %v561_v55, %v562_v62 }
 0x105   :  { %v362_v56 = vmax.f32 %v360_v53, %v361_v54  ;;  %v348_v57 = vsel %vm346_vm7, %v342_v52, 0.0 }
 0x106   :  { %v352_v59 = vsel %vm182_vm4, %v348_v57, -inf  ;;  %v564_v11 = vrot.slane %v563_v6, 1 }
 0x107   :  { %v363_v60 = vrot.slane %v362_v56, 4  ;;  %v353_v61 = vmax.f32 %v351_v58, %v352_v59 }
 0x108   :  { %v565_v16 = vmax.f32 %v563_v6, %v564_v11 }
 0x109   :  { %v364_v63 = vmax.f32 %v362_v56, %v363_v60  ;;  %v354_v0 = vrot.slane %v353_v61, 4 }
 0x10a   :  { %v579_v18 = vsel %vm568_vm5, %v565_v16, %v556_v17 }
 0x10b   :  { %v355_v2 = vmax.f32 %v353_v61, %v354_v0  ;;  %v365_v3 = vrot.slane %v364_v63, 2 }
 0x10d   :  { %v356_v4 = vrot.slane %v355_v2, 2  ;;  %v366_v5 = vmax.f32 %v364_v63, %v365_v3 }
 0x10f   :  { %v357_v7 = vmax.f32 %v355_v2, %v356_v4  ;;  %v367_v8 = vrot.slane %v366_v5, 1 }
 0x111   :  { %v358_v10 = vrot.slane %v357_v7, 1  ;;  %v368_v13 = vmax.f32 %v366_v5, %v367_v8 }
 0x113   :  { %v359_v12 = vmax.f32 %v357_v7, %v358_v10 }
 0x115   :  { %v573_v15 = vsel %vm568_vm5, %v368_v13, %v359_v12 }
 0x116   :  { %574 = vrot.lane.b32.xlu0 %v573_v15, %s844_s7 }
 0x11a   :  { %580 = vrot.lane.b32.xlu0 %v579_v18, %s845_s23 }
 0x188   :  { %v575_v19 = vpop.permute.xlu0 %574 }
 0x189   :  { %v583_v34 = vsel %vm182_vm4, %v1039_v20, %v575_v19 }
 0x18c   :  { %v581_v21 = vpop.permute.xlu0 %580 }
 0x18d   :  { %v585_v22 = vsel %vm584_vm9, %v583_v34, %v581_v21 }
 0x18e   :  { %v586_v23 = vpack.c.bf16 %v585_v22, %v585_v22 }
 0x190   :  { %774 = vmatmul.mubr.msk.bf16.vlgmr.msra.gmra.mxu0 %vm606_vm10, %v586_v23 }
 0x250   :  { %v648_v25 = vpop.f32.mrf.mxu0 }
 0x251   :  { %v649_v26 = vadd.f32 %v708_v24, %v648_v25 }
 0x252   :  { %v775_v27 = vpop.f32.mrf.mxu0 }
 0x253   :  { %654 = vst [vmem:[#allocation2] sm:$0x3] %v649_v26 }
 0x254   :  { %v651_v28 = vpop.f32.mrf.mxu0 }
 0x255   :  { %830 = shalt.err (!%p827_p4)
}
 0x256   :  { %664 = dma.vmem_to_hbm [thread:$0]  %s662_s27, 32, %s1076_s11, [#allocation3]   ;;  %v776_v20 = vpop.f32.mrf.mxu0 }
 0x257   :  { %839 = dma.done.wait [#allocation3], 32  }
 0x258   :  { %840 = vsyncadd [#allocation3], 4294967264 }
 0x259   :  { %668 = vsyncpa [#allocation3], 1 }

</bundles_post_ra>
